<compile_context>
chip_gen: v6e
topology: v6e:2x2x1
jax: 0.10.0
libtpu: 0.0.40
codegen_flags: <defaults>
</compile_context>

<pallas_src>
import functools

import jax
import jax.numpy as jnp
from jax import lax
from jax.experimental import pallas as pl
from jax.experimental.pallas import tpu as pltpu


_HIDDEN = (128, 128, 64, 32)   # hidden_dim[1:] of the PyTorch module


def _sigmoid(x):
    # Single-EUP-op sigmoid (tanh) instead of exp + divide.
    return 0.5 * (jnp.tanh(0.5 * x) + 1.0)


def _mlp_kernel(x_ref,
                w1_ref, b1_ref,
                w2_ref, b2_ref,
                w3_ref, b3_ref,
                w4_ref, b4_ref,
                w5p_ref, b5_ref,
                o_ref):
    # bf16 MXU inputs, f32 accumulation, f32 element-wise / EUP work.
    h = x_ref[...].astype(jnp.bfloat16)

    h = jnp.dot(h, w1_ref[...], preferred_element_type=jnp.float32) + b1_ref[...]
    h = _sigmoid(h)
    h = jnp.dot(h.astype(jnp.bfloat16), w2_ref[...],
                preferred_element_type=jnp.float32) + b2_ref[...]
    h = _sigmoid(h)
    h = jnp.dot(h.astype(jnp.bfloat16), w3_ref[...],
                preferred_element_type=jnp.float32) + b3_ref[...]
    h = _sigmoid(h)
    h = jnp.dot(h.astype(jnp.bfloat16), w4_ref[...],
                preferred_element_type=jnp.float32) + b4_ref[...]
    h = _sigmoid(h)

    # Final Linear(32, 1): padded weight (8, 32) @ h^T -> (8, block_b); keep row 0
    # so the single output feature is lane-dense (unmasked full-width stores).
    out8 = lax.dot_general(
        w5p_ref[...], h.astype(jnp.bfloat16),
        dimension_numbers=(((1,), (1,)), ((), ())),
        preferred_element_type=jnp.float32)                 # (8, block_b)
    o_ref[...] = (out8[0:1, :] + b5_ref[...]).astype(o_ref.dtype)


def _pick_block_b(B, block_b):
    """Batch-tile size: multiple of 128, and >= 2 grid steps once B >= 256 (v7x 2 TCs)."""
    if B < 256:
        return B
    bb = (min(block_b, B // 2) // 128) * 128
    return max(bb, 128)


@functools.partial(jax.jit, static_argnames=("block_b",))
def fcn_forward(x, params, block_b=256):
    """x: (B, n_tasks+6) f32. params: list of (W, b) with W (in, out) bf16, b (1, out) f32."""
    B, d_in = x.shape
    bb = _pick_block_b(B, block_b)
    grid = (pl.cdiv(B, bb),)

    (w1, b1), (w2, b2), (w3, b3), (w4, b4), (w5, b5) = params

    # Final layer weight (32, 1) -> (1, 32), zero-padded to (8, 32) so the last matmul
    # has an aligned sublane dim and a lane-dense (1, B) result.
    w5t = w5.T
    w5p = jnp.zeros((8, w5t.shape[1]), w5t.dtype).at[0:1, :].set(w5t)

    def full_spec(arr):
        # Whole (tiny) parameter, same block every grid step -> stays resident in VMEM.
        return pl.BlockSpec(arr.shape, lambda i: (0, 0))

    flat_params = [w1, b1, w2, b2, w3, b3, w4, b4, w5p, b5]
    in_specs = [pl.BlockSpec((bb, d_in), lambda i: (i, 0))]
    in_specs += [full_spec(p) for p in flat_params]
    out_spec = pl.BlockSpec((1, bb), lambda i: (0, i))

    per_row_flops = 2 * (d_in * 128 + 128 * 128 + 128 * 64 + 64 * 32 + 32 * 1)
    param_bytes = sum(int(p.size) * p.dtype.itemsize for p in flat_params)
    cost = pl.CostEstimate(
        flops=int(B * per_row_flops),
        transcendentals=int(B * sum(_HIDDEN)),
        bytes_accessed=int(B * d_in * x.dtype.itemsize + B * 4 + param_bytes),
    )

    out_row = pl.pallas_call(
        _mlp_kernel,
        out_shape=jax.ShapeDtypeStruct((1, B), jnp.float32),
        grid_spec=pltpu.PrefetchScalarGridSpec(
            num_scalar_prefetch=0,
            grid=grid,
            in_specs=in_specs,
            out_specs=out_spec,
        ),
        compiler_params=pltpu.CompilerParams(
            dimension_semantics=("parallel",)),
        cost_estimate=cost,
    )(x, *flat_params)

    # (1, B) row -> (B, 1) column; contiguous reshape, same element order.
    return out_row.reshape(B, 1)


def init_params(key, n_tasks):
    """Deterministic init matching FCN_Model(n_tasks) layer shapes.

    hidden_dim = [n_tasks+6, 128, 128, 64, 32], final Linear(32, 1).
    PyTorch Linear weight is (out, in); we store its transpose (in, out) in bf16.
    """
    dims = [n_tasks + 6, 128, 128, 64, 32, 1]
    params = []
    for i in range(len(dims) - 1):
        fan_in, fan_out = dims[i], dims[i + 1]
        key, kw, kb = jax.random.split(key, 3)
        bound = 1.0 / (fan_in ** 0.5)
        w = jax.random.uniform(kw, (fan_in, fan_out), jnp.float32,
                               minval=-bound, maxval=bound)
        b = jax.random.uniform(kb, (1, fan_out), jnp.float32,
                               minval=-bound, maxval=bound)
        params.append((w.astype(jnp.bfloat16), b))
    return params


def fcn_reference(x, params):
    """Pure-JAX f32 reference of the module's forward pass."""
    h = x
    n = len(params)
    for idx, (w, b) in enumerate(params):
        h = h @ w.astype(jnp.float32) + b
        if idx < n - 1:
            h = jax.nn.sigmoid(h)
    return h


if __name__ == "__main__":
    n_tasks = 2                 # input dim = n_tasks + 6 = 8
    batch = 64                  # small test shape; B < 256 -> single full-batch tile

    key = jax.random.PRNGKey(0)
    key, kx = jax.random.split(key)
    x = jax.random.normal(kx, (batch, n_tasks + 6), dtype=jnp.float32)

    params = init_params(key, n_tasks)

    out = fcn_forward(x, params)
    out = jax.block_until_ready(out)

    ref = fcn_reference(x, params)
    assert out.shape == (batch, 1), out.shape
    err = jnp.max(jnp.abs(out - ref))
    # bf16 MXU inputs with f32 accumulation vs pure-f32 reference.
    assert jnp.allclose(out, ref, atol=2e-2, rtol=2e-2), f"max err {err}"

    print("KERNEL_OK")
</pallas_src>

<mosaic_0001>
module attributes {stable_mosaic.version = 11 : i64} {
  func.func @_mlp_kernel(%arg0: i32, %arg1: memref<64x8xf32, #tpu.memory_space<vmem>>, %arg2: memref<8x128xbf16, #tpu.memory_space<vmem>>, %arg3: memref<1x128xf32, #tpu.memory_space<vmem>>, %arg4: memref<128x128xbf16, #tpu.memory_space<vmem>>, %arg5: memref<1x128xf32, #tpu.memory_space<vmem>>, %arg6: memref<128x64xbf16, #tpu.memory_space<vmem>>, %arg7: memref<1x64xf32, #tpu.memory_space<vmem>>, %arg8: memref<64x32xbf16, #tpu.memory_space<vmem>>, %arg9: memref<1x32xf32, #tpu.memory_space<vmem>>, %arg10: memref<8x32xbf16, #tpu.memory_space<vmem>>, %arg11: memref<1x1xf32, #tpu.memory_space<vmem>>, %arg12: memref<1x64xf32, #tpu.memory_space<vmem>>) attributes {dimension_semantics = [#tpu.dimension_semantics<parallel>], iteration_bounds = array<i64: 1>, scalar_prefetch = 0 : i64, scratch_operands = 0 : i64, tpu.core_type = #tpu.core_type<tc>, window_params = [{transform_indices = @transform_0, window_bounds = array<i64: 64, 8>}, {pipeline_mode = #tpu.pipeline_mode<synchronous>, transform_indices = @transform_1, window_bounds = array<i64: 8, 128>}, {pipeline_mode = #tpu.pipeline_mode<synchronous>, transform_indices = @transform_2, window_bounds = array<i64: 1, 128>}, {pipeline_mode = #tpu.pipeline_mode<synchronous>, transform_indices = @transform_3, window_bounds = array<i64: 128, 128>}, {pipeline_mode = #tpu.pipeline_mode<synchronous>, transform_indices = @transform_4, window_bounds = array<i64: 1, 128>}, {pipeline_mode = #tpu.pipeline_mode<synchronous>, transform_indices = @transform_5, window_bounds = array<i64: 128, 64>}, {pipeline_mode = #tpu.pipeline_mode<synchronous>, transform_indices = @transform_6, window_bounds = array<i64: 1, 64>}, {pipeline_mode = #tpu.pipeline_mode<synchronous>, transform_indices = @transform_7, window_bounds = array<i64: 64, 32>}, {pipeline_mode = #tpu.pipeline_mode<synchronous>, transform_indices = @transform_8, window_bounds = array<i64: 1, 32>}, {pipeline_mode = #tpu.pipeline_mode<synchronous>, transform_indices = @transform_9, window_bounds = array<i64: 8, 32>}, {pipeline_mode = #tpu.pipeline_mode<synchronous>, transform_indices = @transform_10, window_bounds = array<i64: 1, 1>}, {transform_indices = @transform_11, window_bounds = array<i64: 1, 64>}]} {
    %c0 = arith.constant 0 : index
    %c0_0 = arith.constant 0 : index
    %0 = vector.load %arg1[%c0, %c0_0] : memref<64x8xf32, #tpu.memory_space<vmem>>, vector<64x8xf32>
    %1 = arith.truncf %0 : vector<64x8xf32> to vector<64x8xbf16>
    %c0_1 = arith.constant 0 : index
    %c0_2 = arith.constant 0 : index
    %2 = vector.load %arg2[%c0_1, %c0_2] : memref<8x128xbf16, #tpu.memory_space<vmem>>, vector<8x128xbf16>
    %cst = arith.constant dense<0.000000e+00> : vector<64x128xf32>
    %3 = tpu.matmul %1, %2, %cst {dimension_numbers = #tpu.dot_dimension_numbers<[1], [0], [0], [1], [0, 0, 1, 1], [], []>} : vector<64x8xbf16>, vector<8x128xbf16>, vector<64x128xf32> -> vector<64x128xf32>
    %c0_3 = arith.constant 0 : index
    %c0_4 = arith.constant 0 : index
    %4 = vector.load %arg3[%c0_3, %c0_4] : memref<1x128xf32, #tpu.memory_space<vmem>>, vector<1x128xf32>
    %5 = vector.broadcast %4 : vector<1x128xf32> to vector<64x128xf32>
    %6 = arith.addf %3, %5 : vector<64x128xf32>
    %cst_5 = arith.constant 5.000000e-01 : f32
    %7 = vector.broadcast %cst_5 : f32 to vector<64x128xf32>
    %8 = arith.mulf %7, %6 : vector<64x128xf32>
    %9 = math.tanh %8 : vector<64x128xf32>
    %cst_6 = arith.constant 1.000000e+00 : f32
    %10 = vector.broadcast %cst_6 : f32 to vector<64x128xf32>
    %11 = arith.addf %9, %10 : vector<64x128xf32>
    %cst_7 = arith.constant 5.000000e-01 : f32
    %12 = vector.broadcast %cst_7 : f32 to vector<64x128xf32>
    %13 = arith.mulf %12, %11 : vector<64x128xf32>
    %14 = arith.truncf %13 : vector<64x128xf32> to vector<64x128xbf16>
    %c0_8 = arith.constant 0 : index
    %c0_9 = arith.constant 0 : index
    %15 = vector.load %arg4[%c0_8, %c0_9] : memref<128x128xbf16, #tpu.memory_space<vmem>>, vector<128x128xbf16>
    %cst_10 = arith.constant dense<0.000000e+00> : vector<64x128xf32>
    %16 = tpu.matmul %14, %15, %cst_10 {dimension_numbers = #tpu.dot_dimension_numbers<[1], [0], [0], [1], [0, 0, 1, 1], [], []>} : vector<64x128xbf16>, vector<128x128xbf16>, vector<64x128xf32> -> vector<64x128xf32>
    %c0_11 = arith.constant 0 : index
    %c0_12 = arith.constant 0 : index
    %17 = vector.load %arg5[%c0_11, %c0_12] : memref<1x128xf32, #tpu.memory_space<vmem>>, vector<1x128xf32>
    %18 = vector.broadcast %17 : vector<1x128xf32> to vector<64x128xf32>
    %19 = arith.addf %16, %18 : vector<64x128xf32>
    %cst_13 = arith.constant 5.000000e-01 : f32
    %20 = vector.broadcast %cst_13 : f32 to vector<64x128xf32>
    %21 = arith.mulf %20, %19 : vector<64x128xf32>
    %22 = math.tanh %21 : vector<64x128xf32>
    %cst_14 = arith.constant 1.000000e+00 : f32
    %23 = vector.broadcast %cst_14 : f32 to vector<64x128xf32>
    %24 = arith.addf %22, %23 : vector<64x128xf32>
    %cst_15 = arith.constant 5.000000e-01 : f32
    %25 = vector.broadcast %cst_15 : f32 to vector<64x128xf32>
    %26 = arith.mulf %25, %24 : vector<64x128xf32>
    %27 = arith.truncf %26 : vector<64x128xf32> to vector<64x128xbf16>
    %c0_16 = arith.constant 0 : index
    %c0_17 = arith.constant 0 : index
    %28 = vector.load %arg6[%c0_16, %c0_17] : memref<128x64xbf16, #tpu.memory_space<vmem>>, vector<128x64xbf16>
    %cst_18 = arith.constant dense<0.000000e+00> : vector<64x64xf32>
    %29 = tpu.matmul %27, %28, %cst_18 {dimension_numbers = #tpu.dot_dimension_numbers<[1], [0], [0], [1], [0, 0, 1, 1], [], []>} : vector<64x128xbf16>, vector<128x64xbf16>, vector<64x64xf32> -> vector<64x64xf32>
    %c0_19 = arith.constant 0 : index
    %c0_20 = arith.constant 0 : index
    %30 = vector.load %arg7[%c0_19, %c0_20] : memref<1x64xf32, #tpu.memory_space<vmem>>, vector<1x64xf32>
    %31 = vector.broadcast %30 : vector<1x64xf32> to vector<64x64xf32>
    %32 = arith.addf %29, %31 : vector<64x64xf32>
    %cst_21 = arith.constant 5.000000e-01 : f32
    %33 = vector.broadcast %cst_21 : f32 to vector<64x64xf32>
    %34 = arith.mulf %33, %32 : vector<64x64xf32>
    %35 = math.tanh %34 : vector<64x64xf32>
    %cst_22 = arith.constant 1.000000e+00 : f32
    %36 = vector.broadcast %cst_22 : f32 to vector<64x64xf32>
    %37 = arith.addf %35, %36 : vector<64x64xf32>
    %cst_23 = arith.constant 5.000000e-01 : f32
    %38 = vector.broadcast %cst_23 : f32 to vector<64x64xf32>
    %39 = arith.mulf %38, %37 : vector<64x64xf32>
    %40 = arith.truncf %39 : vector<64x64xf32> to vector<64x64xbf16>
    %c0_24 = arith.constant 0 : index
    %c0_25 = arith.constant 0 : index
    %41 = vector.load %arg8[%c0_24, %c0_25] : memref<64x32xbf16, #tpu.memory_space<vmem>>, vector<64x32xbf16>
    %cst_26 = arith.constant dense<0.000000e+00> : vector<64x32xf32>
    %42 = tpu.matmul %40, %41, %cst_26 {dimension_numbers = #tpu.dot_dimension_numbers<[1], [0], [0], [1], [0, 0, 1, 1], [], []>} : vector<64x64xbf16>, vector<64x32xbf16>, vector<64x32xf32> -> vector<64x32xf32>
    %c0_27 = arith.constant 0 : index
    %c0_28 = arith.constant 0 : index
    %43 = vector.load %arg9[%c0_27, %c0_28] : memref<1x32xf32, #tpu.memory_space<vmem>>, vector<1x32xf32>
    %44 = vector.broadcast %43 : vector<1x32xf32> to vector<64x32xf32>
    %45 = arith.addf %42, %44 : vector<64x32xf32>
    %cst_29 = arith.constant 5.000000e-01 : f32
    %46 = vector.broadcast %cst_29 : f32 to vector<64x32xf32>
    %47 = arith.mulf %46, %45 : vector<64x32xf32>
    %48 = math.tanh %47 : vector<64x32xf32>
    %cst_30 = arith.constant 1.000000e+00 : f32
    %49 = vector.broadcast %cst_30 : f32 to vector<64x32xf32>
    %50 = arith.addf %48, %49 : vector<64x32xf32>
    %cst_31 = arith.constant 5.000000e-01 : f32
    %51 = vector.broadcast %cst_31 : f32 to vector<64x32xf32>
    %52 = arith.mulf %51, %50 : vector<64x32xf32>
    %c0_32 = arith.constant 0 : index
    %c0_33 = arith.constant 0 : index
    %53 = vector.load %arg10[%c0_32, %c0_33] : memref<8x32xbf16, #tpu.memory_space<vmem>>, vector<8x32xbf16>
    %54 = arith.truncf %52 : vector<64x32xf32> to vector<64x32xbf16>
    %cst_34 = arith.constant dense<0.000000e+00> : vector<8x64xf32>
    %55 = tpu.matmul %53, %54, %cst_34 {dimension_numbers = #tpu.dot_dimension_numbers<[1], [1], [0], [0], [0, 0, 1, 0], [], []>} : vector<8x32xbf16>, vector<64x32xbf16>, vector<8x64xf32> -> vector<8x64xf32>
    %56 = vector.extract_strided_slice %55 {offsets = [0, 0], sizes = [1, 64], strides = [1, 1]} : vector<8x64xf32> to vector<1x64xf32>
    %c0_35 = arith.constant 0 : index
    %c0_36 = arith.constant 0 : index
    %57 = vector.load %arg11[%c0_35, %c0_36] : memref<1x1xf32, #tpu.memory_space<vmem>>, vector<1x1xf32>
    %58 = vector.broadcast %57 : vector<1x1xf32> to vector<1x64xf32>
    %59 = arith.addf %56, %58 : vector<1x64xf32>
    %c0_37 = arith.constant 0 : index
    %c0_38 = arith.constant 0 : index
    %60 = vector.load %arg12[%c0_37, %c0_38] : memref<1x64xf32, #tpu.memory_space<vmem>>, vector<1x64xf32>
    tpu.vector_store %arg12[%c0_37, %c0_38], %59 {strides = array<i32>} : memref<1x64xf32, #tpu.memory_space<vmem>>, vector<1x64xf32>,
    return
  }
  func.func @transform_0(%arg0: i32) -> (i32, i32) {
    %c0_i32 = arith.constant 0 : i32
    %c0_i32_0 = arith.constant 0 : i32
    return %arg0, %c0_i32 : i32, i32
  }
  func.func @transform_1(%arg0: i32) -> (i32, i32) {
    %c0_i32 = arith.constant 0 : i32
    %c0_i32_0 = arith.constant 0 : i32
    %c0_i32_1 = arith.constant 0 : i32
    return %c0_i32, %c0_i32_0 : i32, i32
  }
  func.func @transform_2(%arg0: i32) -> (i32, i32) {
    %c0_i32 = arith.constant 0 : i32
    %c0_i32_0 = arith.constant 0 : i32
    %c0_i32_1 = arith.constant 0 : i32
    return %c0_i32, %c0_i32_0 : i32, i32
  }
  func.func @transform_3(%arg0: i32) -> (i32, i32) {
    %c0_i32 = arith.constant 0 : i32
    %c0_i32_0 = arith.constant 0 : i32
    %c0_i32_1 = arith.constant 0 : i32
    return %c0_i32, %c0_i32_0 : i32, i32
  }
  func.func @transform_4(%arg0: i32) -> (i32, i32) {
    %c0_i32 = arith.constant 0 : i32
    %c0_i32_0 = arith.constant 0 : i32
    %c0_i32_1 = arith.constant 0 : i32
    return %c0_i32, %c0_i32_0 : i32, i32
  }
  func.func @transform_5(%arg0: i32) -> (i32, i32) {
    %c0_i32 = arith.constant 0 : i32
    %c0_i32_0 = arith.constant 0 : i32
    %c0_i32_1 = arith.constant 0 : i32
    return %c0_i32, %c0_i32_0 : i32, i32
  }
  func.func @transform_6(%arg0: i32) -> (i32, i32) {
    %c0_i32 = arith.constant 0 : i32
    %c0_i32_0 = arith.constant 0 : i32
    %c0_i32_1 = arith.constant 0 : i32
    return %c0_i32, %c0_i32_0 : i32, i32
  }
  func.func @transform_7(%arg0: i32) -> (i32, i32) {
    %c0_i32 = arith.constant 0 : i32
    %c0_i32_0 = arith.constant 0 : i32
    %c0_i32_1 = arith.constant 0 : i32
    return %c0_i32, %c0_i32_0 : i32, i32
  }
  func.func @transform_8(%arg0: i32) -> (i32, i32) {
    %c0_i32 = arith.constant 0 : i32
    %c0_i32_0 = arith.constant 0 : i32
    %c0_i32_1 = arith.constant 0 : i32
    return %c0_i32, %c0_i32_0 : i32, i32
  }
  func.func @transform_9(%arg0: i32) -> (i32, i32) {
    %c0_i32 = arith.constant 0 : i32
    %c0_i32_0 = arith.constant 0 : i32
    %c0_i32_1 = arith.constant 0 : i32
    return %c0_i32, %c0_i32_0 : i32, i32
  }
  func.func @transform_10(%arg0: i32) -> (i32, i32) {
    %c0_i32 = arith.constant 0 : i32
    %c0_i32_0 = arith.constant 0 : i32
    %c0_i32_1 = arith.constant 0 : i32
    return %c0_i32, %c0_i32_0 : i32, i32
  }
  func.func @transform_11(%arg0: i32) -> (i32, i32) {
    %c0_i32 = arith.constant 0 : i32
    %c0_i32_0 = arith.constant 0 : i32
    return %c0_i32, %arg0 : i32, i32
  }
}

</mosaic_0001>

<bundles_post_ra>
// kernel: fcn_forward.1
= control target key start
LH: loop header
LB: loop body
LE: loop exit
PB: predicated region body
PF: predicated region fallthrough
CT: control target
= control target key end

     0   :  { %s1224_s0 = inlined_call_operand.vmem [shape: f32[64,8], index: 0, kind: input, shape index: {}]   ;;  %s1225_s1 = inlined_call_operand.vmem [shape: bf16[8,128], index: 1, kind: input, shape index: {}]   ;;  %s1226_s2 = inlined_call_operand.vmem [shape: f32[1,128], index: 2, kind: input, shape index: {}]   ;;  %s1227_s3 = inlined_call_operand.vmem [shape: bf16[128,128], index: 3, kind: input, shape index: {}]   ;;  %s1228_s4 = inlined_call_operand.vmem [shape: f32[1,128], index: 4, kind: input, shape index: {}]   ;;  %s1229_s5 = inlined_call_operand.vmem [shape: bf16[128,64], index: 5, kind: input, shape index: {}]   ;;  %s1230_s6 = inlined_call_operand.vmem [shape: f32[1,64], index: 6, kind: input, shape index: {}]   ;;  %s1231_s7 = inlined_call_operand.vmem [shape: bf16[64,32], index: 7, kind: input, shape index: {}]   ;;  %s1232_s8 = inlined_call_operand.vmem [shape: f32[1,32], index: 8, kind: input, shape index: {}]   ;;  %s1233_s9 = inlined_call_operand.vmem [shape: bf16[8,32], index: 9, kind: input, shape index: {}]   ;;  %s1234_s10 = inlined_call_operand.<no memory space> [shape: f32[1,1], index: 10, kind: input, shape index: {}]   ;;  %s1235_s11 = inlined_call_operand.hbm [shape: f32[1,64], index: 11, kind: output, shape index: {}]  }
   0x1   :  { %v16_v0 = vstv %s1234_s10 }
   0x2   :  { %17 = vst [vmem:[#allocation2] sm:$0x1] %v16_v0 }
   0x3   :  { %v54_v1 = vld [vmem:[%s1225_s1] sm:$0xf]  ;;  %vm75_vm0 = vcmask 1043456   ;;  %v43_v3 = vld [vmem:[%s1224_s0 + $0x8] sm:$0xff]  ;;  %vm62_vm1 = vcmask 64512   ;;  %v44_v6 = vld [vmem:[%s1224_s0 + $0x10] sm:$0xff] }
   0x4   :  { %v42_v2 = vld [vmem:[%s1224_s0] sm:$0xff]  ;;  %922 = vmatprep.subr.msk.bf16.mxu1 %vm75_vm0, %v54_v1  ;;  %v77_v4 = vsel %vm75_vm0, %v54_v1, 0  ;;  %v45_v7 = vld [vmem:[%s1224_s0 + $0x18] sm:$0xff]  ;;  %v47_v10 = vld [vmem:[%s1224_s0 + $0x28] sm:$0xff] }
   0x5   :  { %v50_v5 = vpack.c.bf16 %v43_v3, %v42_v2  ;;  %v46_v8 = vld [vmem:[%s1224_s0 + $0x20] sm:$0xff]  ;;  %837 = vmatpush3.bf16.msra.mxu1 %v77_v4  ;;  %v51_v9 = vpack.c.bf16 %v45_v7, %v44_v6  ;;  %v48_v12 = vld [vmem:[%s1224_s0 + $0x30] sm:$0xff]  ;;  %v49_v13 = vld [vmem:[%s1224_s0 + $0x38] sm:$0xff] }
   0x6   :  { %v52_v11 = vpack.c.bf16 %v47_v10, %v46_v8  ;;  %v53_v14 = vpack.c.bf16 %v49_v13, %v48_v12 }
   0x7   :  { %838 = vmatprep.mubr.msk.bf16.mxu1 %vm62_vm1, %v50_v5 }
   0x8   :  { %839 = vmatmul.mubr.msk.bf16.vlgmr.msra.gmra.mxu1 %vm62_vm1, %v51_v9 }
   0x9   :  { %842 = vmatprep.mubr.msk.bf16.mxu1 %vm62_vm1, %v52_v11 }
  0x10   :  { %843 = vmatmul.mubr.msk.bf16.gmra.mxu1 %vm62_vm1, %v53_v14 }
  0x11   :  { %18 = vsyncpa [#allocation4], 0  ;;  %v928_v15 = vld [vmem:[%s1227_s3 + $0x38] sm:$0xff]   ;;  %v929_v16 = vld [vmem:[%s1227_s3 + $0x30] sm:$0xff]   ;;  %vm563_vm2 = vcmask 523264   ;;  %vm1035_vm3 = vmmov 0  }
  0x12   :  { %846 = vmatprep.subr.bf16.mxu1 %v928_v15  ;;  %v930_v17 = vld [vmem:[%s1227_s3 + $0x28] sm:$0xff]   ;;  %v931_v18 = vld [vmem:[%s1227_s3 + $0x20] sm:$0xff]   ;;  %v932_v19 = vld [vmem:[%s1227_s3 + $0x18] sm:$0xff]   ;;  %vm678_vm4 = vcmask 261120   ;;  %s1037_s13 = smov [#allocation3]   ;;  %vm745_vm5 = vcmask 516096  }
  0x13   :  { %847 = vmatpush3.bf16.msra.mxu1 %v928_v15  ;;  %v933_v20 = vld [vmem:[%s1227_s3 + $0x10] sm:$0xff]   ;;  %v934_v21 = vld [vmem:[%s1227_s3 + $0x8] sm:$0xff]   ;;  %v935_v22 = vld [vmem:[%s1227_s3] sm:$0xff]   ;;  %s753_s14 = sshll.u32 %s1037_s13, 4  ;;  %s754_s14 = int_to_ptr.vmem [resolvable:$true] %s753_s14 }
  0x14   :  { %848 = vmatprep.subr.bf16.mxu1 %v929_v16  ;;  %v761_v23 = vld [vmem:[%s1226_s2] ss:$0 sm:$0xff]  ;;  %v936_v12 = vld [vmem:[%s1229_s5 + $0x38] sm:$0xff]   ;;  %v937_v13 = vld [vmem:[%s1229_s5 + $0x30] sm:$0xff]   ;;  %s1012_s15 = scalar_lea.vmem %s754_s14, 16  ;;  %s1016_s16 = scalar_lea.vmem %s754_s14, 32 }
  0x15   :  { %870 = vmatprep.subr.bf16.mxu0 %v936_v12  ;;  %v938_v14 = vld [vmem:[%s1229_s5 + $0x28] sm:$0xff]   ;;  %v939_v15 = vld [vmem:[%s1229_s5 + $0x20] sm:$0xff]   ;;  %p1013_p0 = scmp.ne.s32.totalorder %s754_s14, %s1012_s15  ;;  %p1017_p1 = scmp.lt.s32.totalorder %s754_s14, %s754_s14 }
  0x16   :  { %871 = vmatpush3.bf16.msra.mxu0 %v936_v12  ;;  %v947_v12 = vld [vmem:[%s1231_s7] sm:$0xff]   ;;  %p1018_p2 = scmp.lt.s32.totalorder %s1016_s16, %s1012_s15 }
  0x17   :  { %849 = vmatpush3.bf16.msra.mxu1 %v929_v16  ;;  %872 = vmatprep.subr.bf16.mxu0 %v937_v13  ;;  %v940_v16 = vld [vmem:[%s1229_s5 + $0x18] sm:$0xff]  }
  0x18   :  { %850 = vmatprep.subr.bf16.mxu1 %v930_v17  ;;  %p1019_p3 = por %p1018_p2, %p1017_p1 }
  0x1a   :  { %873 = vmatpush3.bf16.msra.mxu0 %v937_v13  ;;  %v775_v13 = vld [vmem:[%s1230_s6] ss:$0 sm:$0xff]  ;;  %p1020_p4 = pnand %p1019_p3, %p1013_p0 }
  0x1b   :  { %851 = vmatpush3.bf16.msra.mxu1 %v930_v17  ;;  %874 = vmatprep.subr.bf16.mxu0 %v938_v14  ;;  %v941_v17 = vld [vmem:[%s1229_s5 + $0x10] sm:$0xff]  }
  0x1c   :  { %852 = vmatprep.subr.bf16.mxu1 %v931_v18 }
  0x1e   :  { %875 = vmatpush3.bf16.msra.mxu0 %v938_v14 }
  0x1f   :  { %853 = vmatpush3.bf16.msra.mxu1 %v931_v18  ;;  %876 = vmatprep.subr.bf16.mxu0 %v939_v15  ;;  %v942_v18 = vld [vmem:[%s1229_s5 + $0x8] sm:$0xff]  }
  0x20   :  { %854 = vmatprep.subr.bf16.mxu1 %v932_v19 }
  0x22   :  { %877 = vmatpush3.bf16.msra.mxu0 %v939_v15 }
  0x23   :  { %855 = vmatpush3.bf16.msra.mxu1 %v932_v19  ;;  %878 = vmatprep.subr.bf16.mxu0 %v940_v16  ;;  %v943_v19 = vld [vmem:[%s1229_s5] sm:$0xff]  }
  0x24   :  { %856 = vmatprep.subr.bf16.mxu1 %v933_v20 }
  0x26   :  { %879 = vmatpush3.bf16.msra.mxu0 %v940_v16 }
  0x27   :  { %857 = vmatpush3.bf16.msra.mxu1 %v933_v20  ;;  %880 = vmatprep.subr.bf16.mxu0 %v941_v17  ;;  %v766_v20 = vld [vmem:[%s1228_s4] ss:$0 sm:$0xff] }
  0x28   :  { %858 = vmatprep.subr.bf16.mxu1 %v934_v21 }
  0x2a   :  { %881 = vmatpush3.bf16.msra.mxu0 %v941_v17 }
  0x2b   :  { %859 = vmatpush3.bf16.msra.mxu1 %v934_v21  ;;  %882 = vmatprep.subr.bf16.mxu0 %v942_v18 }
  0x2c   :  { %860 = vmatprep.subr.bf16.mxu1 %v935_v22 }
  0x2e   :  { %883 = vmatpush3.bf16.msra.mxu0 %v942_v18 }
  0x2f   :  { %861 = vmatpush3.bf16.msra.mxu1 %v935_v22  ;;  %884 = vmatprep.subr.bf16.mxu0 %v943_v19 }
  0x32   :  { %885 = vmatpush3.bf16.msra.mxu0 %v943_v19 }
  0xc8   :  { %v840_v24 = vpop.f32.mrf.mxu1 }
  0xc9   :  { %v122_v25 = vadd.f32 %v840_v24, %v761_v23 }
  0xca   :  { %v113_v26 = vpop.f32.mrf.mxu1 }
  0xcb   :  { %v114_v27 = vadd.f32 %v761_v23, %v113_v26  ;;  %v146_v28 = vmul.f32 0.5, %v122_v25 }
  0xcc   :  { %v841_v29 = vpop.f32.mrf.mxu1 }
  0xcd   :  { %v144_v30 = vmul.f32 0.5, %v114_v27  ;;  %v125_v31 = vadd.f32 %v841_v29, %v761_v23 }
  0xce   :  { %v116_v32 = vpop.f32.mrf.mxu1 }
  0xcf   :  { %948 = vtanh.f32 %v144_v30  ;;  %v147_v33 = vmul.f32 0.5, %v125_v31  ;;  %v117_v34 = vadd.f32 %v761_v23, %v116_v32 }
  0xd0   :  { %950 = vtanh.f32 %v146_v28  ;;  %v844_v35 = vpop.f32.mrf.mxu1 }
  0xd1   :  { %952 = vtanh.f32 %v147_v33  ;;  %v145_v36 = vmul.f32 0.5, %v117_v34  ;;  %v138_v37 = vadd.f32 %v844_v35, %v761_v23 }
  0xd2   :  { %v129_v38 = vpop.f32.mrf.mxu1 }
  0xd3   :  { %954 = vtanh.f32 %v145_v36  ;;  %v130_v39 = vadd.f32 %v761_v23, %v129_v38  ;;  %v150_v40 = vmul.f32 0.5, %v138_v37 }
  0xd4   :  { %v845_v41 = vpop.f32.mrf.mxu1 }
  0xd5   :  { %v148_v42 = vmul.f32 0.5, %v130_v39  ;;  %v141_v43 = vadd.f32 %v845_v41, %v761_v23 }
  0xd6   :  { %v132_v44 = vpop.f32.mrf.mxu1 }
  0xd7   :  { %956 = vtanh.f32 %v148_v42  ;;  %v151_v45 = vmul.f32 0.5, %v141_v43  ;;  %v133_v46 = vadd.f32 %v761_v23, %v132_v44 }
  0xd8   :  { %958 = vtanh.f32 %v150_v40 }
  0xd9   :  { %960 = vtanh.f32 %v151_v45  ;;  %v149_v47 = vmul.f32 0.5, %v133_v46 }
  0xdb   :  { %962 = vtanh.f32 %v149_v47 }
  0xdc   :  { %v949_v48 = vpop.eup %948 }
  0xdd   :  { %v951_v49 = vpop.eup %950  ;;  %v160_v51 = vadd.f32 1.0, %v949_v48 }
  0xde   :  { %v953_v50 = vpop.eup %952  ;;  %v162_v54 = vadd.f32 1.0, %v951_v49 }
  0xdf   :  { %v163_v52 = vadd.f32 1.0, %v953_v50  ;;  %v168_v57 = vmul.f32 0.5, %v160_v51 }
  0xe0   :  { %v955_v53 = vpop.eup %954  ;;  %v170_v60 = vmul.f32 0.5, %v162_v54 }
  0xe1   :  { %v161_v55 = vadd.f32 1.0, %v955_v53  ;;  %v171_v56 = vmul.f32 0.5, %v163_v52 }
  0xe3   :  { %v169_v58 = vmul.f32 0.5, %v161_v55  ;;  %v177_v0 = vpack.c.bf16 %v171_v56, %v170_v60 }
  0xe4   :  { %v957_v59 = vpop.eup %956 }
  0xe5   :  { %v959_v61 = vpop.eup %958  ;;  %v176_v62 = vpack.c.bf16 %v169_v58, %v168_v57  ;;  %v164_v1 = vadd.f32 1.0, %v957_v59 }
  0xe6   :  { %v961_v63 = vpop.eup %960  ;;  %v166_v4 = vadd.f32 1.0, %v959_v61 }
  0xe7   :  { %v167_v2 = vadd.f32 1.0, %v961_v63  ;;  %862 = vmatprep.mubr.bf16.mxu1 %v176_v62  ;;  %v172_v7 = vmul.f32 0.5, %v164_v1 }
  0xe8   :  { %v963_v3 = vpop.eup %962  ;;  %863 = vmatmul.mubr.bf16.vlgmr.msra.gmra.mxu1 %v177_v0  ;;  %v174_v9 = vmul.f32 0.5, %v166_v4 }
  0xe9   :  { %v165_v5 = vadd.f32 1.0, %v963_v3  ;;  %v175_v6 = vmul.f32 0.5, %v167_v2 }
  0xeb   :  { %v173_v8 = vmul.f32 0.5, %v165_v5  ;;  %v179_v11 = vpack.c.bf16 %v175_v6, %v174_v9  ;;  %v944_v9 = vld [vmem:[%s1231_s7 + $0x18] sm:$0xff]  }
  0xec   :  { %894 = vmatprep.subr.bf16.mxu1 %v944_v9 }
  0xed   :  { %v178_v10 = vpack.c.bf16 %v173_v8, %v172_v7  ;;  %895 = vmatpush3.bf16.msra.mxu1 %v944_v9  ;;  %v784_v9 = vld [vmem:[%s1232_s8] ss:$0 sm:$0xff] }
  0xef   :  { %866 = vmatprep.mubr.bf16.mxu1 %v178_v10  ;;  %v945_v10 = vld [vmem:[%s1231_s7 + $0x10] sm:$0xff]  }
  0xf0   :  { %867 = vmatmul.mubr.bf16.gmra.mxu1 %v179_v11  ;;  %896 = vmatprep.subr.bf16.mxu1 %v945_v10  ;;  %v946_v11 = vld [vmem:[%s1231_s7 + $0x8] sm:$0xff]  }
  0xf1   :  { %897 = vmatpush3.bf16.msra.mxu1 %v945_v10 }
  0xf2   :  { %898 = vmatprep.subr.bf16.mxu1 %v946_v11 }
  0xf5   :  { %899 = vmatpush3.bf16.msra.mxu1 %v946_v11 }
  0xf6   :  { %900 = vmatprep.subr.bf16.mxu1 %v947_v12 }
  0xf9   :  { %901 = vmatpush3.bf16.msra.mxu1 %v947_v12 }
 0x1a8   :  { %v864_v21 = vpop.f32.mrf.mxu1 }
 0x1a9   :  { %v294_v22 = vadd.f32 %v864_v21, %v766_v20 }
 0x1aa   :  { %v285_v23 = vpop.f32.mrf.mxu1 }
 0x1ab   :  { %v286_v24 = vadd.f32 %v766_v20, %v285_v23  ;;  %v318_v25 = vmul.f32 0.5, %v294_v22 }
 0x1ac   :  { %v865_v26 = vpop.f32.mrf.mxu1 }
 0x1ad   :  { %v316_v27 = vmul.f32 0.5, %v286_v24  ;;  %v297_v28 = vadd.f32 %v865_v26, %v766_v20 }
 0x1ae   :  { %v288_v29 = vpop.f32.mrf.mxu1 }
 0x1af   :  { %964 = vtanh.f32 %v316_v27  ;;  %v319_v30 = vmul.f32 0.5, %v297_v28  ;;  %v289_v31 = vadd.f32 %v766_v20, %v288_v29 }
 0x1b0   :  { %966 = vtanh.f32 %v318_v25  ;;  %v868_v32 = vpop.f32.mrf.mxu1 }
 0x1b1   :  { %968 = vtanh.f32 %v319_v30  ;;  %v317_v33 = vmul.f32 0.5, %v289_v31  ;;  %v310_v34 = vadd.f32 %v868_v32, %v766_v20 }
 0x1b2   :  { %v301_v35 = vpop.f32.mrf.mxu1 }
 0x1b3   :  { %970 = vtanh.f32 %v317_v33  ;;  %v302_v36 = vadd.f32 %v766_v20, %v301_v35  ;;  %v322_v37 = vmul.f32 0.5, %v310_v34 }
 0x1b4   :  { %v869_v38 = vpop.f32.mrf.mxu1 }
 0x1b5   :  { %v320_v39 = vmul.f32 0.5, %v302_v36  ;;  %v313_v40 = vadd.f32 %v869_v38, %v766_v20 }
 0x1b6   :  { %v304_v41 = vpop.f32.mrf.mxu1 }
 0x1b7   :  { %972 = vtanh.f32 %v320_v39  ;;  %v323_v42 = vmul.f32 0.5, %v313_v40  ;;  %v305_v43 = vadd.f32 %v766_v20, %v304_v41 }
 0x1b8   :  { %974 = vtanh.f32 %v322_v37 }
 0x1b9   :  { %976 = vtanh.f32 %v323_v42  ;;  %v321_v44 = vmul.f32 0.5, %v305_v43 }
 0x1bb   :  { %978 = vtanh.f32 %v321_v44 }
 0x1bc   :  { %v965_v45 = vpop.eup %964 }
 0x1bd   :  { %v967_v46 = vpop.eup %966  ;;  %v332_v49 = vadd.f32 1.0, %v965_v45 }
 0x1be   :  { %v969_v47 = vpop.eup %968  ;;  %v334_v51 = vadd.f32 1.0, %v967_v46 }
 0x1bf   :  { %v335_v48 = vadd.f32 1.0, %v969_v47  ;;  %v340_v54 = vmul.f32 0.5, %v332_v49 }
 0x1c0   :  { %v971_v50 = vpop.eup %970  ;;  %v342_v57 = vmul.f32 0.5, %v334_v51 }
 0x1c1   :  { %v333_v52 = vadd.f32 1.0, %v971_v50  ;;  %v343_v53 = vmul.f32 0.5, %v335_v48 }
 0x1c3   :  { %v341_v55 = vmul.f32 0.5, %v333_v52  ;;  %v349_v61 = vpack.c.bf16 %v343_v53, %v342_v57 }
 0x1c4   :  { %v973_v56 = vpop.eup %972 }
 0x1c5   :  { %v975_v58 = vpop.eup %974  ;;  %v348_v59 = vpack.c.bf16 %v341_v55, %v340_v54  ;;  %v336_v62 = vadd.f32 1.0, %v973_v56 }
 0x1c6   :  { %v977_v60 = vpop.eup %976  ;;  %v338_v1 = vadd.f32 1.0, %v975_v58 }
 0x1c7   :  { %v339_v63 = vadd.f32 1.0, %v977_v60  ;;  %886 = vmatprep.mubr.bf16.mxu0 %v348_v59  ;;  %v344_v4 = vmul.f32 0.5, %v336_v62 }
 0x1c8   :  { %v979_v0 = vpop.eup %978  ;;  %887 = vmatmul.mubr.bf16.vlgmr.msra.gmra.mxu0 %v349_v61  ;;  %v346_v6 = vmul.f32 0.5, %v338_v1 }
 0x1c9   :  { %v337_v2 = vadd.f32 1.0, %v979_v0  ;;  %v347_v3 = vmul.f32 0.5, %v339_v63 }
 0x1cb   :  { %v345_v5 = vmul.f32 0.5, %v337_v2  ;;  %v351_v8 = vpack.c.bf16 %v347_v3, %v346_v6  ;;  %v1034_v2 = vmov 0.0   ;;  %v734_v3 = vld [vmem:[#allocation2] sm:$0x1] }
 0x1cc   :  { %910 = vmatprep.subr.bf16.mxu0 %v1034_v2 }
 0x1cd   :  { %v350_v7 = vpack.c.bf16 %v345_v5, %v344_v4  ;;  %v1036_v4 = vmov 0  }
 0x1ce   :  { %927 = vset.pattern.permute.xlu0 %v1036_v4 }
 0x1cf   :  { %890 = vmatprep.mubr.bf16.mxu0 %v350_v7  ;;  %737 = vperm.xlu0 %927, %v734_v3  }
 0x1d0   :  { %891 = vmatmul.mubr.bf16.gmra.mxu0 %v351_v8 }
 0x1d1   :  { %918 = vmatprep.mubr.msk.bf16.mxu0 %vm1035_vm3, %v1034_v2 }
 0x24a   :  { %v738_v3 = vpop.permute.xlu0 %737 }
 0x288   :  { %v888_v14 = vpop.f32.mrf.mxu0 }
 0x289   :  { %v466_v15 = vadd.f32 %v888_v14, %v775_v13 }
 0x28a   :  { %v457_v16 = vpop.f32.mrf.mxu0 }
 0x28b   :  { %v458_v17 = vadd.f32 %v775_v13, %v457_v16  ;;  %v490_v18 = vmul.f32 0.5, %v466_v15 }
 0x28c   :  { %v889_v19 = vpop.f32.mrf.mxu0 }
 0x28d   :  { %v488_v20 = vmul.f32 0.5, %v458_v17  ;;  %v469_v21 = vadd.f32 %v889_v19, %v775_v13 }
 0x28e   :  { %v460_v22 = vpop.f32.mrf.mxu0 }
 0x28f   :  { %980 = vtanh.f32 %v488_v20  ;;  %v491_v23 = vmul.f32 0.5, %v469_v21  ;;  %v461_v24 = vadd.f32 %v775_v13, %v460_v22 }
 0x290   :  { %982 = vtanh.f32 %v490_v18  ;;  %v892_v25 = vpop.f32.mrf.mxu0 }
 0x291   :  { %984 = vtanh.f32 %v491_v23  ;;  %v489_v26 = vmul.f32 0.5, %v461_v24  ;;  %v482_v27 = vadd.f32 %v892_v25, %v775_v13 }
 0x292   :  { %v473_v28 = vpop.f32.mrf.mxu0 }
 0x293   :  { %986 = vtanh.f32 %v489_v26  ;;  %v474_v29 = vadd.f32 %v775_v13, %v473_v28  ;;  %v494_v30 = vmul.f32 0.5, %v482_v27 }
 0x294   :  { %v893_v31 = vpop.f32.mrf.mxu0 }
 0x295   :  { %v492_v32 = vmul.f32 0.5, %v474_v29  ;;  %v485_v33 = vadd.f32 %v893_v31, %v775_v13 }
 0x296   :  { %v476_v34 = vpop.f32.mrf.mxu0 }
 0x297   :  { %988 = vtanh.f32 %v492_v32  ;;  %v495_v35 = vmul.f32 0.5, %v485_v33  ;;  %v477_v36 = vadd.f32 %v775_v13, %v476_v34 }
 0x298   :  { %990 = vtanh.f32 %v494_v30 }
 0x299   :  { %992 = vtanh.f32 %v495_v35  ;;  %v493_v37 = vmul.f32 0.5, %v477_v36 }
 0x29b   :  { %994 = vtanh.f32 %v493_v37 }
 0x29c   :  { %v981_v38 = vpop.eup %980 }
 0x29d   :  { %v983_v39 = vpop.eup %982  ;;  %v504_v41 = vadd.f32 1.0, %v981_v38 }
 0x29e   :  { %v985_v40 = vpop.eup %984  ;;  %v506_v44 = vadd.f32 1.0, %v983_v39 }
 0x29f   :  { %v507_v42 = vadd.f32 1.0, %v985_v40  ;;  %v512_v47 = vmul.f32 0.5, %v504_v41 }
 0x2a0   :  { %v987_v43 = vpop.eup %986  ;;  %v514_v50 = vmul.f32 0.5, %v506_v44 }
 0x2a1   :  { %v505_v45 = vadd.f32 1.0, %v987_v43  ;;  %v515_v46 = vmul.f32 0.5, %v507_v42 }
 0x2a3   :  { %v513_v48 = vmul.f32 0.5, %v505_v45  ;;  %v521_v54 = vpack.c.bf16 %v515_v46, %v514_v50 }
 0x2a4   :  { %v989_v49 = vpop.eup %988 }
 0x2a5   :  { %v991_v51 = vpop.eup %990  ;;  %v520_v52 = vpack.c.bf16 %v513_v48, %v512_v47  ;;  %v508_v55 = vadd.f32 1.0, %v989_v49 }
 0x2a6   :  { %v993_v53 = vpop.eup %992  ;;  %v510_v58 = vadd.f32 1.0, %v991_v51 }
 0x2a7   :  { %v511_v56 = vadd.f32 1.0, %v993_v53  ;;  %902 = vmatprep.mubr.msk.bf16.mxu1 %vm563_vm2, %v520_v52  ;;  %v516_v61 = vmul.f32 0.5, %v508_v55 }
 0x2a8   :  { %v995_v57 = vpop.eup %994  ;;  %903 = vmatmul.mubr.msk.bf16.vlgmr.msra.gmra.mxu1 %vm563_vm2, %v521_v54  ;;  %v518_v63 = vmul.f32 0.5, %v510_v58 }
 0x2a9   :  { %v509_v59 = vadd.f32 1.0, %v995_v57  ;;  %v519_v60 = vmul.f32 0.5, %v511_v56 }
 0x2ab   :  { %v517_v62 = vmul.f32 0.5, %v509_v59  ;;  %v523_v1 = vpack.c.bf16 %v519_v60, %v518_v63  ;;  %v740_v63 = vlaneseq }
 0x2ad   :  { %v522_v0 = vpack.c.bf16 %v517_v62, %v516_v61  ;;  %v673_v62 = vld [vmem:[%s1233_s9] sm:$0xf] }
 0x2af   :  { %906 = vmatprep.mubr.msk.bf16.mxu1 %vm563_vm2, %v522_v0  ;;  %v741_v0 = vshrl.u32 %v740_v63, 7 }
 0x2b0   :  { %907 = vmatmul.mubr.msk.bf16.gmra.mxu1 %vm563_vm2, %v523_v1 }
 0x2b1   :  { %v742_v1 = vsub.s32 0, %v741_v0 }
 0x2b3   :  { %v743_v4 = vrot.slane %v738_v3, %v742_v1 }
 0x368   :  { %v904_v5 = vpop.f32.mrf.mxu1 }
 0x369   :  { %v619_v23 = vadd.f32 %v904_v5, %v784_v9 }
 0x36a   :  { %v610_v6 = vpop.f32.mrf.mxu1 }
 0x36b   :  { %v643_v25 = vmul.f32 0.5, %v619_v23  ;;  %v611_v28 = vadd.f32 %v784_v9, %v610_v6 }
 0x36c   :  { %v905_v7 = vpop.f32.mrf.mxu1 }
 0x36d   :  { %v622_v21 = vadd.f32 %v905_v7, %v784_v9  ;;  %v641_v33 = vmul.f32 0.5, %v611_v28 }
 0x36e   :  { %v613_v8 = vpop.f32.mrf.mxu1 }
 0x36f   :  { %v644_v24 = vmul.f32 0.5, %v622_v21  ;;  %v614_v26 = vadd.f32 %v784_v9, %v613_v8 }
 0x370   :  { %v908_v10 = vpop.f32.mrf.mxu1 }
 0x371   :  { %v635_v11 = vadd.f32 %v908_v10, %v784_v9  ;;  %v642_v29 = vmul.f32 0.5, %v614_v26 }
 0x372   :  { %v626_v12 = vpop.f32.mrf.mxu1 }
 0x373   :  { %v647_v13 = vmul.f32 0.5, %v635_v11  ;;  %v627_v14 = vadd.f32 %v784_v9, %v626_v12 }
 0x374   :  { %v909_v15 = vpop.f32.mrf.mxu1 }
 0x375   :  { %996 = vtanh.f32 %v647_v13  ;;  %v638_v16 = vadd.f32 %v909_v15, %v784_v9  ;;  %v645_v17 = vmul.f32 0.5, %v627_v14 }
 0x376   :  { %v629_v18 = vpop.f32.mrf.mxu1 }
 0x377   :  { %v648_v19 = vmul.f32 0.5, %v638_v16  ;;  %v630_v20 = vadd.f32 %v784_v9, %v629_v18 }
 0x379   :  { %998 = vtanh.f32 %v648_v19  ;;  %v646_v22 = vmul.f32 0.5, %v630_v20 }
 0x37a   :  { %1000 = vtanh.f32 %v645_v17 }
 0x37b   :  { %1002 = vtanh.f32 %v646_v22 }
 0x37c   :  { %1004 = vtanh.f32 %v644_v24 }
 0x37d   :  { %1006 = vtanh.f32 %v643_v25 }
 0x37e   :  { %1008 = vtanh.f32 %v642_v29 }
 0x37f   :  { %1010 = vtanh.f32 %v641_v33 }
 0x382   :  { %v997_v27 = vpop.eup %996 }
 0x383   :  { %v663_v30 = vadd.f32 1.0, %v997_v27 }
 0x385   :  { %v671_v36 = vmul.f32 0.5, %v663_v30 }
 0x386   :  { %v999_v31 = vpop.eup %998 }
 0x387   :  { %v1001_v32 = vpop.eup %1000  ;;  %v664_v34 = vadd.f32 1.0, %v999_v31 }
 0x388   :  { %v1003_v35 = vpop.eup %1002  ;;  %v661_v39 = vadd.f32 1.0, %v1001_v32 }
 0x389   :  { %v672_v37 = vmul.f32 0.5, %v664_v34  ;;  %v662_v38 = vadd.f32 1.0, %v1003_v35  ;;  %v1005_v43 = vpop.eup %1004 }
 0x38a   :  { %v669_v44 = vmul.f32 0.5, %v661_v39  ;;  %v1007_v45 = vpop.eup %1006  ;;  %v660_v46 = vadd.f32 1.0, %v1005_v43 }
 0x38b   :  { %v677_v40 = vpack.c.bf16 %v672_v37, %v671_v36  ;;  %v670_v41 = vmul.f32 0.5, %v662_v38  ;;  %v659_v48 = vadd.f32 1.0, %v1007_v45  ;;  %v1009_v51 = vpop.eup %1008 }
 0x38c   :  { %v668_v49 = vmul.f32 0.5, %v660_v46  ;;  %v1011_v53 = vpop.eup %1010  ;;  %v658_v54 = vadd.f32 1.0, %v1009_v51 }
 0x38d   :  { %v692_v42 = vsel %vm678_vm4, %v677_v40, 0  ;;  %v676_v47 = vpack.c.bf16 %v670_v41, %v669_v44  ;;  %v667_v52 = vmul.f32 0.5, %v659_v48  ;;  %v657_v56 = vadd.f32 1.0, %v1011_v53 }
 0x38e   :  { %911 = vmatpush3.bf16.xpose.msra.mxu0 %v692_v42  ;;  %v666_v57 = vmul.f32 0.5, %v658_v54 }
 0x38f   :  { %912 = vmatprep.subr.bf16.mxu0 %v1034_v2  ;;  %v689_v50 = vsel %vm678_vm4, %v676_v47, 0  ;;  %v675_v55 = vpack.c.bf16 %v668_v49, %v667_v52  ;;  %v665_v59 = vmul.f32 0.5, %v657_v56 }
 0x391   :  { %v686_v58 = vsel %vm678_vm4, %v675_v55, 0  ;;  %v674_v60 = vpack.c.bf16 %v666_v57, %v665_v59 }
 0x393   :  { %v683_v61 = vsel %vm678_vm4, %v674_v60, 0 }
 0x396   :  { %913 = vmatpush3.bf16.xpose.msra.mxu0 %v689_v50 }
 0x397   :  { %914 = vmatprep.subr.bf16.mxu0 %v1034_v2 }
 0x39e   :  { %915 = vmatpush3.bf16.xpose.msra.mxu0 %v686_v58 }
 0x39f   :  { %916 = vmatprep.subr.bf16.mxu0 %v1034_v2 }
 0x3a6   :  { %917 = vmatpush3.bf16.xpose.msra.mxu0 %v683_v61 }
 0x3ad   :  { %919 = vmatmul.mubr.msk.bf16.vlgmr.msra.gmra.mxu0 %vm678_vm4, %v673_v62 }
 0x46d   :  { %v728_v5 = vpop.f32.mrf.mxu0 }
 0x46e   :  { %v744_v2 = vadd.f32 %v743_v4, %v728_v5 }
 0x46f   :  { %v920_v6 = vpop.f32.mrf.mxu0 }
 0x470   :  { %746 = vst.msk [vmem:[#allocation3] sm:$0x1] %vm745_vm5, %v744_v2 }
 0x471   :  { %v731_v7 = vpop.f32.mrf.mxu0 }
 0x472   :  { %1023 = shalt.err (!%p1020_p4)
}
 0x473   :  { %756 = dma.vmem_to_hbm [thread:$0]  %s754_s14, 16, %s1235_s11, [#allocation4]   ;;  %v921_v8 = vpop.f32.mrf.mxu0 }
 0x474   :  { %1032 = dma.done.wait [#allocation4], 16  }
 0x475   :  { %1033 = vsyncadd [#allocation4], 4294967280 }
 0x476   :  { %760 = vsyncpa [#allocation4], 1 }

</bundles_post_ra>
